<compile_context>
chip_gen: v7x
topology: tpu7x:2x2x1
jax: 0.10.0
libtpu: 0.0.40
codegen_flags: <defaults>
</compile_context>

<pallas_src>
import jax
import jax.numpy as jnp
from jax.experimental import pallas as pl
from jax.experimental.pallas import tpu as pltpu


def _round_up(x, m):
    return ((x + m - 1) // m) * m


def actor_kernel(x_ref, w1_ref, b1_ref, w2_ref, b2_ref, w3_ref, b3_ref, o_ref):
    # fc1 + ReLU (f32 accumulate on MXU, f32 epilogue on VPU)
    h1 = jnp.dot(x_ref[...], w1_ref[...], preferred_element_type=jnp.float32)
    h1 = jnp.maximum(h1 + b1_ref[...], 0.0)
    # fc2 + ReLU
    h2 = jnp.dot(h1.astype(w2_ref.dtype), w2_ref[...],
                 preferred_element_type=jnp.float32)
    h2 = jnp.maximum(h2 + b2_ref[...], 0.0)
    # logits: unpadded act_dim columns (masked vst beats 16x inflated write bytes)
    out = jnp.dot(h2.astype(w3_ref.dtype), w3_ref[...],
                  preferred_element_type=jnp.float32)
    o_ref[...] = (out + b3_ref[...]).astype(o_ref.dtype)


def actor_forward_pallas(x, params, *, batch_tile=None, out_dtype=None):
    """x: (B, obs_dim). params: w_i stored transposed as (in, out), b_i as (1, out)."""
    w1, b1, w2, b2, w3, b3 = (params[k] for k in ("w1", "b1", "w2", "b2", "w3", "b3"))
    B, obs_dim = x.shape
    hidden = w1.shape[1]
    act_dim = w3.shape[1]
    out_dtype = out_dtype or x.dtype

    # Biases in f32 for the epilogue (no-op if prepare_params() already did it).
    b1, b2, b3 = (b.astype(jnp.float32) for b in (b1, b2, b3))

    # --- batch-tile selection -----------------------------------------------------
    # Big tiles amortize per-step overhead; keep >= 2 grid steps when B >= 16 so the
    # parallel batch axis shards across both v7x TensorCores. VMEM cost at tb=2048 is
    # ~2.5 MB double-buffered — trivial even against v7x's 64 MiB.
    if batch_tile is None:
        if B >= 4096:
            tb = 2048
        elif B >= 16:
            tb = _round_up(pl.cdiv(B, 2), 8)
        else:
            tb = _round_up(max(B, 1), 8)
    else:
        tb = min(_round_up(batch_tile, 8), _round_up(B, 8))
    grid = (pl.cdiv(B, tb),)
    # Ragged B: no jnp.pad of x. The boundary block's extra rows are independent
    # garbage; Pallas drops their writeback past row B. Safe because there is no
    # cross-row reduction anywhere in this kernel.

    full = lambda a: pl.BlockSpec(a.shape, lambda i: (0, 0))  # resident in VMEM

    # --- advisory cost estimate (real flops / bytes) --------------------------------
    isz = lambda a: jnp.dtype(a.dtype).itemsize
    flops = 2 * B * (obs_dim * hidden + hidden * hidden + hidden * act_dim)
    bytes_accessed = (
        B * obs_dim * isz(x)
        + sum(int(a.size) * isz(a) for a in (w1, b1, w2, b2, w3, b3))
        + B * act_dim * jnp.dtype(out_dtype).itemsize
    )

    return pl.pallas_call(
        actor_kernel,
        out_shape=jax.ShapeDtypeStruct((B, act_dim), out_dtype),
        grid=grid,
        in_specs=[
            pl.BlockSpec((tb, obs_dim), lambda i: (i, 0)),
            full(w1), full(b1), full(w2), full(b2), full(w3), full(b3),
        ],
        out_specs=pl.BlockSpec((tb, act_dim), lambda i: (i, 0)),
        compiler_params=pltpu.CompilerParams(
            dimension_semantics=("parallel",),
        ),
        cost_estimate=pl.CostEstimate(
            flops=flops, transcendentals=0, bytes_accessed=bytes_accessed),
    )(x, w1, b1, w2, b2, w3, b3)


def actor_ref(x, p):
    h1 = jnp.maximum(x @ p["w1"] + p["b1"], 0.0)
    h2 = jnp.maximum(h1 @ p["w2"] + p["b2"], 0.0)
    return h2 @ p["w3"] + p["b3"]


def actor_forward(x, params, *, batch_tile=None, out_dtype=None,
                  min_pallas_batch=64, force_pallas=False):
    """Dispatch: tiny batches go through plain jnp (pallas_call overhead dominates)."""
    if not force_pallas and x.shape[0] < min_pallas_batch:
        return actor_ref(x, params)
    return actor_forward_pallas(x, params, batch_tile=batch_tile, out_dtype=out_dtype)


def prepare_params(params, compute_dtype=jnp.float32):
    """One-time param prep (hoisted out of the per-call path): weights in the MXU
    streaming dtype, biases in f32 for the epilogue."""
    out = {}
    for k, v in params.items():
        out[k] = v.astype(jnp.float32) if k.startswith("b") else v.astype(compute_dtype)
    return out


def init_params(key, obs_dim, act_dim, hidden=64, dtype=jnp.float32):
    """Deterministic synthetic init matching nn.Linear shapes (stored transposed)."""
    ks = jax.random.split(key, 6)

    def linear(kw, kb, fan_in, fan_out):
        bound = 1.0 / jnp.sqrt(fan_in)
        w = jax.random.uniform(kw, (fan_in, fan_out), dtype, -bound, bound)
        b = jax.random.uniform(kb, (1, fan_out), dtype, -bound, bound)
        return w, b

    w1, b1 = linear(ks[0], ks[1], obs_dim, hidden)
    w2, b2 = linear(ks[2], ks[3], hidden, hidden)
    w3, b3 = linear(ks[4], ks[5], hidden, act_dim)
    return dict(w1=w1, b1=b1, w2=w2, b2=b2, w3=w3, b3=b3)


if __name__ == "__main__":
    key = jax.random.PRNGKey(0)
    k_x, k_p, k_x2, k_x3 = jax.random.split(key, 4)

    obs_dim, act_dim, hidden = 32, 8, 64
    params = init_params(k_p, obs_dim, act_dim, hidden)

    # Batched path: >= 2 grid steps (tile = B/2 = 128) so the pipeline and v7x
    # megacore sharding are both exercised.
    batch = 256
    x = jax.random.normal(k_x, (batch, obs_dim), jnp.float32)
    expected = actor_ref(x, params)

    out_f32 = jax.block_until_ready(actor_forward(x, params))
    assert out_f32.shape == (batch, act_dim)
    assert jnp.allclose(out_f32, expected, atol=1e-5, rtol=1e-5)

    # Ragged batch: no wrapper-side padding; the boundary block is handled by Pallas.
    x_rag = jax.random.normal(k_x3, (100, obs_dim), jnp.float32)
    out_rag = jax.block_until_ready(actor_forward(x_rag, params, force_pallas=True))
    assert out_rag.shape == (100, act_dim)
    assert jnp.allclose(out_rag, actor_ref(x_rag, params), atol=1e-5, rtol=1e-5)

    # bf16 streaming path: weights prepared ONCE in bf16 (biases stay f32); x is
    # assumed to already arrive in bf16 so the wrapper never casts it.
    params_bf16 = prepare_params(params, jnp.bfloat16)
    x_bf16 = x.astype(jnp.bfloat16)
    out_bf16 = jax.block_until_ready(actor_forward(x_bf16, params_bf16))
    assert out_bf16.shape == (batch, act_dim)
    assert jnp.allclose(out_bf16.astype(jnp.float32), expected, atol=1e-1, rtol=1e-1)

    # Tiny batch auto-routes to plain jnp (pallas_call overhead not worth it at B=2).
    x_small = jax.random.normal(k_x2, (2, obs_dim), jnp.float32)
    out_small = jax.block_until_ready(actor_forward(x_small, params))
    assert out_small.shape == (2, act_dim)
    assert jnp.allclose(out_small, actor_ref(x_small, params), atol=1e-5, rtol=1e-5)

    print("KERNEL_OK")
</pallas_src>

<mosaic_0001>
module attributes {stable_mosaic.version = 11 : i64} {
  func.func @actor_kernel(%arg0: i32, %arg1: memref<128x32xf32, #tpu.memory_space<vmem>>, %arg2: memref<32x64xf32, #tpu.memory_space<vmem>>, %arg3: memref<1x64xf32, #tpu.memory_space<vmem>>, %arg4: memref<64x64xf32, #tpu.memory_space<vmem>>, %arg5: memref<1x64xf32, #tpu.memory_space<vmem>>, %arg6: memref<64x8xf32, #tpu.memory_space<vmem>>, %arg7: memref<1x8xf32, #tpu.memory_space<vmem>>, %arg8: memref<128x8xf32, #tpu.memory_space<vmem>>) attributes {dimension_semantics = [#tpu.dimension_semantics<parallel>], iteration_bounds = array<i64: 2>, scalar_prefetch = 0 : i64, scratch_operands = 0 : i64, tpu.core_type = #tpu.core_type<tc>, window_params = [{transform_indices = @transform_0, window_bounds = array<i64: 128, 32>}, {pipeline_mode = #tpu.pipeline_mode<synchronous>, transform_indices = @transform_1, window_bounds = array<i64: 32, 64>}, {pipeline_mode = #tpu.pipeline_mode<synchronous>, transform_indices = @transform_2, window_bounds = array<i64: 1, 64>}, {pipeline_mode = #tpu.pipeline_mode<synchronous>, transform_indices = @transform_3, window_bounds = array<i64: 64, 64>}, {pipeline_mode = #tpu.pipeline_mode<synchronous>, transform_indices = @transform_4, window_bounds = array<i64: 1, 64>}, {pipeline_mode = #tpu.pipeline_mode<synchronous>, transform_indices = @transform_5, window_bounds = array<i64: 64, 8>}, {pipeline_mode = #tpu.pipeline_mode<synchronous>, transform_indices = @transform_6, window_bounds = array<i64: 1, 8>}, {transform_indices = @transform_7, window_bounds = array<i64: 128, 8>}]} {
    %c0 = arith.constant 0 : index
    %c0_0 = arith.constant 0 : index
    %0 = vector.load %arg1[%c0, %c0_0] : memref<128x32xf32, #tpu.memory_space<vmem>>, vector<128x32xf32>
    %c0_1 = arith.constant 0 : index
    %c0_2 = arith.constant 0 : index
    %1 = vector.load %arg2[%c0_1, %c0_2] : memref<32x64xf32, #tpu.memory_space<vmem>>, vector<32x64xf32>
    %cst = arith.constant dense<0.000000e+00> : vector<128x64xf32>
    %2 = tpu.matmul %0, %1, %cst {dimension_numbers = #tpu.dot_dimension_numbers<[1], [0], [0], [1], [0, 0, 1, 1], [], []>} : vector<128x32xf32>, vector<32x64xf32>, vector<128x64xf32> -> vector<128x64xf32>
    %c0_3 = arith.constant 0 : index
    %c0_4 = arith.constant 0 : index
    %3 = vector.load %arg3[%c0_3, %c0_4] : memref<1x64xf32, #tpu.memory_space<vmem>>, vector<1x64xf32>
    %4 = vector.broadcast %3 : vector<1x64xf32> to vector<128x64xf32>
    %5 = arith.addf %2, %4 : vector<128x64xf32>
    %cst_5 = arith.constant 0.000000e+00 : f32
    %6 = vector.broadcast %cst_5 : f32 to vector<128x64xf32>
    %7 = arith.maximumf %5, %6 : vector<128x64xf32>
    %c0_6 = arith.constant 0 : index
    %c0_7 = arith.constant 0 : index
    %8 = vector.load %arg4[%c0_6, %c0_7] : memref<64x64xf32, #tpu.memory_space<vmem>>, vector<64x64xf32>
    %cst_8 = arith.constant dense<0.000000e+00> : vector<128x64xf32>
    %9 = tpu.matmul %7, %8, %cst_8 {dimension_numbers = #tpu.dot_dimension_numbers<[1], [0], [0], [1], [0, 0, 1, 1], [], []>} : vector<128x64xf32>, vector<64x64xf32>, vector<128x64xf32> -> vector<128x64xf32>
    %c0_9 = arith.constant 0 : index
    %c0_10 = arith.constant 0 : index
    %10 = vector.load %arg5[%c0_9, %c0_10] : memref<1x64xf32, #tpu.memory_space<vmem>>, vector<1x64xf32>
    %11 = vector.broadcast %10 : vector<1x64xf32> to vector<128x64xf32>
    %12 = arith.addf %9, %11 : vector<128x64xf32>
    %cst_11 = arith.constant 0.000000e+00 : f32
    %13 = vector.broadcast %cst_11 : f32 to vector<128x64xf32>
    %14 = arith.maximumf %12, %13 : vector<128x64xf32>
    %c0_12 = arith.constant 0 : index
    %c0_13 = arith.constant 0 : index
    %15 = vector.load %arg6[%c0_12, %c0_13] : memref<64x8xf32, #tpu.memory_space<vmem>>, vector<64x8xf32>
    %cst_14 = arith.constant dense<0.000000e+00> : vector<128x8xf32>
    %16 = tpu.matmul %14, %15, %cst_14 {dimension_numbers = #tpu.dot_dimension_numbers<[1], [0], [0], [1], [0, 0, 1, 1], [], []>} : vector<128x64xf32>, vector<64x8xf32>, vector<128x8xf32> -> vector<128x8xf32>
    %c0_15 = arith.constant 0 : index
    %c0_16 = arith.constant 0 : index
    %17 = vector.load %arg7[%c0_15, %c0_16] : memref<1x8xf32, #tpu.memory_space<vmem>>, vector<1x8xf32>
    %18 = vector.broadcast %17 : vector<1x8xf32> to vector<128x8xf32>
    %19 = arith.addf %16, %18 : vector<128x8xf32>
    %c0_17 = arith.constant 0 : index
    %c0_18 = arith.constant 0 : index
    %20 = vector.load %arg8[%c0_17, %c0_18] : memref<128x8xf32, #tpu.memory_space<vmem>>, vector<128x8xf32>
    tpu.vector_store %arg8[%c0_17, %c0_18], %19 {strides = array<i32>} : memref<128x8xf32, #tpu.memory_space<vmem>>, vector<128x8xf32>,
    return
  }
  func.func @transform_0(%arg0: i32) -> (i32, i32) {
    %c0_i32 = arith.constant 0 : i32
    %c0_i32_0 = arith.constant 0 : i32
    return %arg0, %c0_i32 : i32, i32
  }
  func.func @transform_1(%arg0: i32) -> (i32, i32) {
    %c0_i32 = arith.constant 0 : i32
    %c0_i32_0 = arith.constant 0 : i32
    %c0_i32_1 = arith.constant 0 : i32
    return %c0_i32, %c0_i32_0 : i32, i32
  }
  func.func @transform_2(%arg0: i32) -> (i32, i32) {
    %c0_i32 = arith.constant 0 : i32
    %c0_i32_0 = arith.constant 0 : i32
    %c0_i32_1 = arith.constant 0 : i32
    return %c0_i32, %c0_i32_0 : i32, i32
  }
  func.func @transform_3(%arg0: i32) -> (i32, i32) {
    %c0_i32 = arith.constant 0 : i32
    %c0_i32_0 = arith.constant 0 : i32
    %c0_i32_1 = arith.constant 0 : i32
    return %c0_i32, %c0_i32_0 : i32, i32
  }
  func.func @transform_4(%arg0: i32) -> (i32, i32) {
    %c0_i32 = arith.constant 0 : i32
    %c0_i32_0 = arith.constant 0 : i32
    %c0_i32_1 = arith.constant 0 : i32
    return %c0_i32, %c0_i32_0 : i32, i32
  }
  func.func @transform_5(%arg0: i32) -> (i32, i32) {
    %c0_i32 = arith.constant 0 : i32
    %c0_i32_0 = arith.constant 0 : i32
    %c0_i32_1 = arith.constant 0 : i32
    return %c0_i32, %c0_i32_0 : i32, i32
  }
  func.func @transform_6(%arg0: i32) -> (i32, i32) {
    %c0_i32 = arith.constant 0 : i32
    %c0_i32_0 = arith.constant 0 : i32
    %c0_i32_1 = arith.constant 0 : i32
    return %c0_i32, %c0_i32_0 : i32, i32
  }
  func.func @transform_7(%arg0: i32) -> (i32, i32) {
    %c0_i32 = arith.constant 0 : i32
    %c0_i32_0 = arith.constant 0 : i32
    return %arg0, %c0_i32 : i32, i32
  }
}

</mosaic_0001>

<bundles_post_ra>
// kernel: tpu_custom_call.1
= control target key start
LH: loop header
LB: loop body
LE: loop exit
PB: predicated region body
PF: predicated region fallthrough
CT: control target
= control target key end

     0   :  { %s1367_s24 = smov 0   ;;  %s1560_s0 = inlined_call_operand.vmem [shape: f32[256,32], index: 0, kind: input, shape index: {}]   ;;  %s1561_s1 = inlined_call_operand.vmem [shape: f32[32,64], index: 1, kind: input, shape index: {}]   ;;  %s1562_s2 = inlined_call_operand.vmem [shape: f32[1,64], index: 2, kind: input, shape index: {}]   ;;  %s1563_s3 = inlined_call_operand.vmem [shape: f32[64,64], index: 3, kind: input, shape index: {}]   ;;  %s1564_s4 = inlined_call_operand.vmem [shape: f32[1,64], index: 4, kind: input, shape index: {}]   ;;  %s1565_s5 = inlined_call_operand.vmem [shape: f32[64,8], index: 5, kind: input, shape index: {}]   ;;  %s1566_s6 = inlined_call_operand.vmem [shape: f32[1,8], index: 6, kind: input, shape index: {}]   ;;  %s1567_s7 = inlined_call_operand.vmem [shape: f32[256,8], index: 7, kind: output, shape index: {}]  }
   0x1 LB: > { %s1025_s25 = sadd.s32 4294967295, %s1325_s24   ;;  %p1029_p0 = scmp.ge.s32.totalorder %s1325_s24, 1  ;;  %s1325_s24 = sphi %s1367_s24, %s17_s24  }
   0x2   : > { %p238_p1 = scmp.lt.s32.totalorder %s1325_s24, 3 }
   0x4   : > { %p239_p2 = pnand %p1029_p0, %p238_p1 }
   0x5   : > { %v298_v0 = vld [vmem:[%s1561_s1] sm:$0xff] (!%p239_p2)  ;;  %v299_v1 = vld [vmem:[%s1561_s1 + $0x8] sm:$0xff] (!%p239_p2)  ;;  %v300_v2 = vld [vmem:[%s1561_s1 + $0x10] sm:$0xff] (!%p239_p2)  ;;  %s1030_s9 = sshll.u32 (!%p239_p2), %s1025_s25, 4  ;;  %vm309_vm0 = vcmask (!%p239_p2), 261120   ;;  %vm534_vm1 = vcmask (!%p239_p2), 523264  }
   0x6   : > { %242 = sbr.rel (%p239_p2) target bundleno = 698 (0x2ba), region = 48  ;;  %v1267_v3 = vpack.c.bf16 (!%p239_p2), %v299_v1, %v298_v0  ;;  %v301_v4 = vld [vmem:[%s1561_s1 + $0x18] sm:$0xff] (!%p239_p2)  ;;  %p271_p3 = scmp.lt.s32.totalorder (!%p239_p2), %s1030_s9, 31  ;;  %v519_v6 = vld [vmem:[%s1563_s3] sm:$0xff] (!%p239_p2)  ;;  %v520_v7 = vld [vmem:[%s1563_s3 + $0x8] sm:$0xff] (!%p239_p2)  ;;  %vm952_vm2 = vcmask (!%p239_p2), 64512  }
   0x7   : > { %v1271_v5 = vpack.c.bf16 (!%p239_p2), %v301_v4, %v300_v2  ;;  %v1275_v8 = vpack.c.bf16 (!%p239_p2), %v520_v7, %v519_v6  ;;  %v521_v10 = vld [vmem:[%s1563_s3 + $0x10] sm:$0xff] (!%p239_p2)  ;;  %v522_v11 = vld [vmem:[%s1563_s3 + $0x18] sm:$0xff] (!%p239_p2)  ;;  %v523_v18 = vld [vmem:[%s1563_s3 + $0x20] sm:$0xff] (!%p239_p2) }
   0x8   : > { %1268 = vmatprep.subr.bf16.mxu0 (!%p239_p2), %v1267_v3  ;;  %1307 = vmatprep.subr.bf16.mxu1 (!%p239_p2), %v1267_v3  ;;  %v1279_v17 = vpack.c.bf16 (!%p239_p2), %v522_v11, %v521_v10  ;;  %v524_v19 = vld [vmem:[%s1563_s3 + $0x28] sm:$0xff] (!%p239_p2)  ;;  %v525_v31 = vld [vmem:[%s1563_s3 + $0x30] sm:$0xff] (!%p239_p2)  ;;  %v526_v32 = vld [vmem:[%s1563_s3 + $0x38] sm:$0xff] (!%p239_p2) }
   0x9   : > { %1270 = vmatpush3.bf16.msra.mxu0 (!%p239_p2), %v1267_v3  ;;  %1309 = vmatpush3.bf16.msra.mxu1 (!%p239_p2), %v1267_v3  ;;  %v1283_v24 = vpack.c.bf16 (!%p239_p2), %v524_v19, %v523_v18  ;;  %v1287_v33 = vpack.c.bf16 (!%p239_p2), %v526_v32, %v525_v31  ;;  %v744_v34 = vld [vmem:[%s1565_s5] sm:$0xff] (!%p239_p2)  ;;  %v745_v35 = vld [vmem:[%s1565_s5 + $0x8] sm:$0xff] (!%p239_p2)  ;;  %v746_v36 = vld [vmem:[%s1565_s5 + $0x10] sm:$0xff] (!%p239_p2) }
   0xa   : > { %1272 = vmatprep.subr.bf16.mxu0 (!%p239_p2), %v1271_v5  ;;  %1308 = vmatprep.subr.bf16.mxu1 (!%p239_p2), %v1271_v5  ;;  %v1291_v37 = vpack.c.bf16 (!%p239_p2), %v745_v35, %v744_v34  ;;  %v747_v38 = vld [vmem:[%s1565_s5 + $0x18] sm:$0xff] (!%p239_p2)  ;;  %v748_v40 = vld [vmem:[%s1565_s5 + $0x20] sm:$0xff] (!%p239_p2)  ;;  %v749_v41 = vld [vmem:[%s1565_s5 + $0x28] sm:$0xff] (!%p239_p2) }
   0xb   : > { %v1295_v39 = vpack.c.bf16 (!%p239_p2), %v747_v38, %v746_v36  ;;  %v1299_v42 = vpack.c.bf16 (!%p239_p2), %v749_v41, %v748_v40  ;;  %v1034_v43 = vld [vmem:[%s1562_s2] ss:$0 sm:$0xff] (!%p239_p2) }
   0xc   : > { %v1051_v31 = vld [vmem:[%s1564_s4] ss:$0 sm:$0xff] (!%p239_p2) }
   0xd   : > { %s1569_s9 = smov (!%p271_p3, %s1030_s9), 31  ;;  %1274 = vmatpush3.bf16.msra.mxu0 %v1271_v5  ;;  %1310 = vmatpush3.bf16.msra.mxu1 %v1271_v5 }
   0xe   : > { %s1031_s16 = sshll.u32 %s1569_s9, 3  ;;  %1276 = vmatprep.subr.bf16.mxu1 %v1275_v8  ;;  %1292 = vmatprep.subr.bf16.mxu0 %v1291_v37 }
   0xf   : > { %s1401_s19 = scalar_lea.vmem %s1560_s0, %s1031_s16  ;;  %s1523_s15 = scalar_lea.vmem %s1567_s7, %s1031_s16 }
  0x10   : > { %v282_v9 = vld [vmem:[%s1401_s19] sm:$0xff]  ;;  %v283_v12 = vld [vmem:[%s1401_s19 + $0x8] sm:$0xff]  ;;  %v284_v13 = vld [vmem:[%s1401_s19 + $0x10] sm:$0xff] }
  0x11   : > { %1163 = vmatprep.mubr.msk.f32.mxu0 %vm309_vm0, %v282_v9  ;;  %v290_v14 = vld [vmem:[%s1401_s19 + $0x40] sm:$0xff]  ;;  %v291_v15 = vld [vmem:[%s1401_s19 + $0x48] sm:$0xff]  ;;  %v292_v16 = vld [vmem:[%s1401_s19 + $0x50] sm:$0xff] }
  0x12   : > { %1175 = vmatprep.mubr.msk.f32.mxu1 %vm309_vm0, %v290_v14  ;;  %1164 = vmatmul.mubr.msk.f32.vlgmr.msra.gmra.mrb[0].mxu0 %vm309_vm0, %v283_v12  ;;  %v285_v20 = vld [vmem:[%s1401_s19 + $0x18] sm:$0xff]  ;;  %v286_v21 = vld [vmem:[%s1401_s19 + $0x20] sm:$0xff]  ;;  %v287_v25 = vld [vmem:[%s1401_s19 + $0x28] sm:$0xff] }
  0x13   : > { %1166 = vmatprep.mubr.msk.f32.mxu0 %vm309_vm0, %v284_v13  ;;  %1176 = vmatmul.mubr.msk.f32.vlgmr.msra.gmra.mrb[0].mxu1 %vm309_vm0, %v291_v15  ;;  %v293_v22 = vld [vmem:[%s1401_s19 + $0x58] sm:$0xff]  ;;  %v294_v23 = vld [vmem:[%s1401_s19 + $0x60] sm:$0xff]  ;;  %v288_v26 = vld [vmem:[%s1401_s19 + $0x30] sm:$0xff] }
  0x14   : > { %1178 = vmatprep.mubr.msk.f32.mxu1 %vm309_vm0, %v292_v16  ;;  %1278 = vmatpush3.bf16.msra.mxu1 %v1275_v8  ;;  %v295_v27 = vld [vmem:[%s1401_s19 + $0x68] sm:$0xff]  ;;  %v296_v28 = vld [vmem:[%s1401_s19 + $0x70] sm:$0xff]  ;;  %v289_v29 = vld [vmem:[%s1401_s19 + $0x38] sm:$0xff] }
  0x15   : > { %1280 = vmatprep.subr.bf16.mxu1 %v1279_v17  ;;  %v297_v30 = vld [vmem:[%s1401_s19 + $0x78] sm:$0xff]  ;;  %1294 = vmatpush3.bf16.msra.mxu0 %v1291_v37 }
  0x16   : > { %1167 = vmatmul.mubr.msk.f32.gmra.mrb[2].mxu0 %vm309_vm0, %v285_v20  ;;  %1296 = vmatprep.subr.bf16.mxu0 %v1295_v39 }
  0x17   : > { %1169 = vmatprep.mubr.msk.f32.mxu0 %vm309_vm0, %v286_v21  ;;  %1179 = vmatmul.mubr.msk.f32.gmra.mrb[2].mxu1 %vm309_vm0, %v293_v22 }
  0x18   : > { %1181 = vmatprep.mubr.msk.f32.mxu1 %vm309_vm0, %v294_v23  ;;  %1282 = vmatpush3.bf16.msra.mxu1 %v1279_v17 }
  0x19   : > { %1284 = vmatprep.subr.bf16.mxu1 %v1283_v24  ;;  %1298 = vmatpush3.bf16.msra.mxu0 %v1295_v39 }
  0x1a   : > { %1170 = vmatmul.mubr.msk.f32.gmra.mrb[4].mxu0 %vm309_vm0, %v287_v25  ;;  %1300 = vmatprep.subr.bf16.mxu0 %v1299_v42 }
  0x1b   : > { %1172 = vmatprep.mubr.msk.f32.mxu0 %vm309_vm0, %v288_v26  ;;  %1182 = vmatmul.mubr.msk.f32.gmra.mrb[4].mxu1 %vm309_vm0, %v295_v27 }
  0x1c   : > { %1184 = vmatprep.mubr.msk.f32.mxu1 %vm309_vm0, %v296_v28  ;;  %1286 = vmatpush3.bf16.msra.mxu1 %v1283_v24  ;;  %v750_v28 = vld [vmem:[%s1565_s5 + $0x30] sm:$0xff] }
  0x1d   : > { %1288 = vmatprep.subr.bf16.mxu1 %v1287_v33  ;;  %1302 = vmatpush3.bf16.msra.mxu0 %v1299_v42 }
  0x1e   : > { %1173 = vmatmul.mubr.msk.f32.gmra.mrb[6].mxu0 %vm309_vm0, %v289_v29  ;;  %v751_v29 = vld [vmem:[%s1565_s5 + $0x38] sm:$0xff] }
  0x1f   : > { %1185 = vmatmul.mubr.msk.f32.gmra.mrb[6].mxu1 %vm309_vm0, %v297_v30  ;;  %v1303_v30 = vpack.c.bf16 %v751_v29, %v750_v28 }
  0x20   : > { %1290 = vmatpush3.bf16.msra.mxu1 %v1287_v33 }
  0x21   : > { %1304 = vmatprep.subr.bf16.mxu0 %v1303_v30 }
  0x22   : > { %1306 = vmatpush3.bf16.msra.mxu0 %v1303_v30 }
  0xe5   : > { %v1165_v44 = vpop.f32.mrb[0].mxu0 }
  0xe6   : > { %v430_v45 = vadd.f32 %v1165_v44, %v1034_v43  ;;  %v424_v46 = vpop.f32.mrb[1].mxu0  ;;  %v1177_v47 = vpop.f32.mrb[0].mxu1 }
  0xe7   : > { %v425_v48 = vadd.f32 %v1034_v43, %v424_v46  ;;  %v464_v49 = vpop.f32.mrb[1].mxu1  ;;  %v470_v15 = vadd.f32 %v1177_v47, %v1034_v43 }
  0xe8   : > { %v504_v52 = vmax.f32 %v430_v45, 0.0  ;;  %v465_v4 = vadd.f32 %v1034_v43, %v464_v49 }
  0xe9   : > { %v503_v50 = vmax.f32 %v425_v48, 0.0  ;;  %v1168_v51 = vpop.f32.mrb[2].mxu0  ;;  %v512_v18 = vmax.f32 %v470_v15, 0.0 }
  0xea   : > { %v440_v53 = vadd.f32 %v1168_v51, %v1034_v43  ;;  %v434_v54 = vpop.f32.mrb[3].mxu0  ;;  %v1180_v55 = vpop.f32.mrb[2].mxu1  ;;  %v511_v12 = vmax.f32 %v465_v4, 0.0 }
  0xeb   : > { %v435_v56 = vadd.f32 %v1034_v43, %v434_v54  ;;  %1203 = vmatprep.mubr.msk.f32.mxu1 %vm534_vm1, %v503_v50  ;;  %v474_v57 = vpop.f32.mrb[3].mxu1  ;;  %v480_v19 = vadd.f32 %v1180_v55, %v1034_v43 }
  0xec   : > { %1204 = vmatmul.mubr.msk.f32.vlgmr.msra.gmra.mrb[8].mxu1 %vm534_vm1, %v504_v52  ;;  %v506_v60 = vmax.f32 %v440_v53, 0.0  ;;  %v475_v13 = vadd.f32 %v1034_v43, %v474_v57 }
  0xed   : > { %v505_v58 = vmax.f32 %v435_v56, 0.0  ;;  %v1171_v59 = vpop.f32.mrb[4].mxu0  ;;  %v514_v22 = vmax.f32 %v480_v19, 0.0 }
  0xee   : > { %v450_v61 = vadd.f32 %v1171_v59, %v1034_v43  ;;  %v444_v62 = vpop.f32.mrb[5].mxu0  ;;  %v1183_v63 = vpop.f32.mrb[4].mxu1  ;;  %v513_v16 = vmax.f32 %v475_v13, 0.0 }
  0xef   : > { %v445_v0 = vadd.f32 %v1034_v43, %v444_v62  ;;  %1206 = vmatprep.mubr.msk.f32.mxu1 %vm534_vm1, %v505_v58  ;;  %v484_v1 = vpop.f32.mrb[5].mxu1  ;;  %v490_v23 = vadd.f32 %v1183_v63, %v1034_v43 }
  0xf0   : > { %1207 = vmatmul.mubr.msk.f32.gmra.mrb[10].mxu1 %vm534_vm1, %v506_v60  ;;  %v508_v5 = vmax.f32 %v450_v61, 0.0  ;;  %v485_v17 = vadd.f32 %v1034_v43, %v484_v1 }
  0xf1   : > { %v507_v2 = vmax.f32 %v445_v0, 0.0  ;;  %v1174_v3 = vpop.f32.mrb[6].mxu0  ;;  %v516_v25 = vmax.f32 %v490_v23, 0.0 }
  0xf2   : > { %v460_v6 = vadd.f32 %v1174_v3, %v1034_v43  ;;  %v454_v7 = vpop.f32.mrb[7].mxu0  ;;  %v1186_v8 = vpop.f32.mrb[6].mxu1  ;;  %v515_v20 = vmax.f32 %v485_v17, 0.0 }
  0xf3   : > { %v455_v9 = vadd.f32 %v1034_v43, %v454_v7  ;;  %1209 = vmatprep.mubr.msk.f32.mxu1 %vm534_vm1, %v507_v2  ;;  %v494_v10 = vpop.f32.mrb[7].mxu1  ;;  %v500_v26 = vadd.f32 %v1186_v8, %v1034_v43 }
  0xf4   : > { %1210 = vmatmul.mubr.msk.f32.gmra.mrb[12].mxu1 %vm534_vm1, %v508_v5  ;;  %v510_v14 = vmax.f32 %v460_v6, 0.0  ;;  %v495_v21 = vadd.f32 %v1034_v43, %v494_v10 }
  0xf5   : > { %v509_v11 = vmax.f32 %v455_v9, 0.0  ;;  %v518_v27 = vmax.f32 %v500_v26, 0.0 }
  0xf6   : > { %v517_v24 = vmax.f32 %v495_v21, 0.0 }
  0xf7   : > { %1212 = vmatprep.mubr.msk.f32.mxu1 %vm534_vm1, %v509_v11 }
  0xf8   : > { %1213 = vmatmul.mubr.msk.f32.gmra.mrb[14].mxu1 %vm534_vm1, %v510_v14 }
  0xf9   : > { %1215 = vmatprep.mubr.msk.f32.mxu1 %vm534_vm1, %v511_v12 }
  0xfc   : > { %1216 = vmatmul.mubr.msk.f32.gmra.mrb[16].mxu1 %vm534_vm1, %v512_v18 }
  0xfd   : > { %1218 = vmatprep.mubr.msk.f32.mxu1 %vm534_vm1, %v513_v16  ;;  %v1068_v16 = vld [vmem:[%s1566_s6] ss:$0 sm:$0xff] }
 0x100   : > { %1219 = vmatmul.mubr.msk.f32.gmra.mrb[18].mxu1 %vm534_vm1, %v514_v22 }
 0x101   : > { %1221 = vmatprep.mubr.msk.f32.mxu1 %vm534_vm1, %v515_v20 }
 0x104   : > { %1222 = vmatmul.mubr.msk.f32.gmra.mrb[20].mxu1 %vm534_vm1, %v516_v25 }
 0x105   : > { %1224 = vmatprep.mubr.msk.f32.mxu1 %vm534_vm1, %v517_v24 }
 0x108   : > { %1225 = vmatmul.mubr.msk.f32.gmra.mrb[22].mxu1 %vm534_vm1, %v518_v27 }
 0x1bf   : > { %v1205_v32 = vpop.f32.mrb[8].mxu1 }
 0x1c0   : > { %v655_v33 = vadd.f32 %v1205_v32, %v1051_v31  ;;  %v649_v34 = vpop.f32.mrb[9].mxu1 }
 0x1c1   : > { %v650_v35 = vadd.f32 %v1051_v31, %v649_v34 }
 0x1c2   : > { %v729_v38 = vmax.f32 %v655_v33, 0.0 }
 0x1c3   : > { %v728_v36 = vmax.f32 %v650_v35, 0.0  ;;  %v1208_v37 = vpop.f32.mrb[10].mxu1 }
 0x1c4   : > { %v665_v39 = vadd.f32 %v1208_v37, %v1051_v31  ;;  %v659_v40 = vpop.f32.mrb[11].mxu1 }
 0x1c5   : > { %v660_v41 = vadd.f32 %v1051_v31, %v659_v40  ;;  %1243 = vmatprep.mubr.msk.f32.mxu0 %vm534_vm1, %v728_v36 }
 0x1c6   : > { %1244 = vmatmul.mubr.msk.f32.vlgmr.msra.gmra.mrb[8].mxu0 %vm534_vm1, %v729_v38  ;;  %v731_v44 = vmax.f32 %v665_v39, 0.0 }
 0x1c7   : > { %v730_v42 = vmax.f32 %v660_v41, 0.0  ;;  %v1211_v43 = vpop.f32.mrb[12].mxu1 }
 0x1c8   : > { %v675_v45 = vadd.f32 %v1211_v43, %v1051_v31  ;;  %v669_v46 = vpop.f32.mrb[13].mxu1 }
 0x1c9   : > { %v670_v47 = vadd.f32 %v1051_v31, %v669_v46  ;;  %1246 = vmatprep.mubr.msk.f32.mxu0 %vm534_vm1, %v730_v42 }
 0x1ca   : > { %1247 = vmatmul.mubr.msk.f32.gmra.mrb[10].mxu0 %vm534_vm1, %v731_v44  ;;  %v733_v50 = vmax.f32 %v675_v45, 0.0 }
 0x1cb   : > { %v732_v48 = vmax.f32 %v670_v47, 0.0  ;;  %v1214_v49 = vpop.f32.mrb[14].mxu1 }
 0x1cc   : > { %v685_v51 = vadd.f32 %v1214_v49, %v1051_v31  ;;  %v679_v52 = vpop.f32.mrb[15].mxu1 }
 0x1cd   : > { %v680_v53 = vadd.f32 %v1051_v31, %v679_v52  ;;  %1249 = vmatprep.mubr.msk.f32.mxu0 %vm534_vm1, %v732_v48 }
 0x1ce   : > { %1250 = vmatmul.mubr.msk.f32.gmra.mrb[12].mxu0 %vm534_vm1, %v733_v50  ;;  %v735_v56 = vmax.f32 %v685_v51, 0.0 }
 0x1cf   : > { %v734_v54 = vmax.f32 %v680_v53, 0.0  ;;  %v1217_v55 = vpop.f32.mrb[16].mxu1 }
 0x1d0   : > { %v695_v57 = vadd.f32 %v1217_v55, %v1051_v31  ;;  %v689_v58 = vpop.f32.mrb[17].mxu1 }
 0x1d1   : > { %v690_v59 = vadd.f32 %v1051_v31, %v689_v58  ;;  %1252 = vmatprep.mubr.msk.f32.mxu0 %vm534_vm1, %v734_v54 }
 0x1d2   : > { %1253 = vmatmul.mubr.msk.f32.gmra.mrb[14].mxu0 %vm534_vm1, %v735_v56  ;;  %v737_v62 = vmax.f32 %v695_v57, 0.0 }
 0x1d3   : > { %v736_v60 = vmax.f32 %v690_v59, 0.0  ;;  %v1220_v61 = vpop.f32.mrb[18].mxu1 }
 0x1d4   : > { %v705_v63 = vadd.f32 %v1220_v61, %v1051_v31  ;;  %v699_v0 = vpop.f32.mrb[19].mxu1 }
 0x1d5   : > { %v700_v1 = vadd.f32 %v1051_v31, %v699_v0  ;;  %1255 = vmatprep.mubr.msk.f32.mxu0 %vm534_vm1, %v736_v60 }
 0x1d6   : > { %1256 = vmatmul.mubr.msk.f32.gmra.mrb[16].mxu0 %vm534_vm1, %v737_v62  ;;  %v739_v4 = vmax.f32 %v705_v63, 0.0 }
 0x1d7   : > { %v738_v2 = vmax.f32 %v700_v1, 0.0  ;;  %v1223_v3 = vpop.f32.mrb[20].mxu1 }
 0x1d8   : > { %v715_v5 = vadd.f32 %v1223_v3, %v1051_v31  ;;  %v709_v6 = vpop.f32.mrb[21].mxu1 }
 0x1d9   : > { %v710_v7 = vadd.f32 %v1051_v31, %v709_v6  ;;  %1258 = vmatprep.mubr.msk.f32.mxu0 %vm534_vm1, %v738_v2 }
 0x1da   : > { %1259 = vmatmul.mubr.msk.f32.gmra.mrb[18].mxu0 %vm534_vm1, %v739_v4  ;;  %v741_v10 = vmax.f32 %v715_v5, 0.0 }
 0x1db   : > { %v740_v8 = vmax.f32 %v710_v7, 0.0  ;;  %v1226_v9 = vpop.f32.mrb[22].mxu1 }
 0x1dc   : > { %v725_v11 = vadd.f32 %v1226_v9, %v1051_v31  ;;  %v719_v12 = vpop.f32.mrb[23].mxu1 }
 0x1dd   : > { %v720_v13 = vadd.f32 %v1051_v31, %v719_v12  ;;  %1261 = vmatprep.mubr.msk.f32.mxu0 %vm534_vm1, %v740_v8 }
 0x1de   : > { %1262 = vmatmul.mubr.msk.f32.gmra.mrb[20].mxu0 %vm534_vm1, %v741_v10  ;;  %v743_v15 = vmax.f32 %v725_v11, 0.0 }
 0x1df   : > { %v742_v14 = vmax.f32 %v720_v13, 0.0 }
 0x1e1   : > { %1264 = vmatprep.mubr.msk.f32.mxu0 %vm534_vm1, %v742_v14 }
 0x1e2   : > { %1265 = vmatmul.mubr.msk.f32.gmra.mrb[22].mxu0 %vm534_vm1, %v743_v15 }
 0x299   : > { %v1245_v17 = vpop.f32.mrb[8].mxu0 }
 0x29a   : > { %v879_v18 = vadd.f32 %v1245_v17, %v1068_v16  ;;  %v873_v19 = vpop.f32.mrb[9].mxu0 }
 0x29b   : > { %v874_v20 = vadd.f32 %v1068_v16, %v873_v19 }
 0x29c   : > { %954 = vst.msk [vmem:[%s1523_s15 + $0x8] sm:$0xff] %vm952_vm2, %v879_v18 }
 0x29d   : > { %953 = vst.msk [vmem:[%s1523_s15] sm:$0xff] %vm952_vm2, %v874_v20  ;;  %v1248_v21 = vpop.f32.mrb[10].mxu0 }
 0x29e   : > { %v889_v22 = vadd.f32 %v1248_v21, %v1068_v16  ;;  %v883_v23 = vpop.f32.mrb[11].mxu0 }
 0x29f   : > { %v884_v24 = vadd.f32 %v1068_v16, %v883_v23 }
 0x2a0   : > { %956 = vst.msk [vmem:[%s1523_s15 + $0x18] sm:$0xff] %vm952_vm2, %v889_v22 }
 0x2a1   : > { %955 = vst.msk [vmem:[%s1523_s15 + $0x10] sm:$0xff] %vm952_vm2, %v884_v24  ;;  %v1251_v25 = vpop.f32.mrb[12].mxu0 }
 0x2a2   : > { %v899_v26 = vadd.f32 %v1251_v25, %v1068_v16  ;;  %v893_v27 = vpop.f32.mrb[13].mxu0 }
 0x2a3   : > { %v894_v28 = vadd.f32 %v1068_v16, %v893_v27 }
 0x2a4   : > { %958 = vst.msk [vmem:[%s1523_s15 + $0x28] sm:$0xff] %vm952_vm2, %v899_v26 }
 0x2a5   : > { %957 = vst.msk [vmem:[%s1523_s15 + $0x20] sm:$0xff] %vm952_vm2, %v894_v28  ;;  %v1254_v29 = vpop.f32.mrb[14].mxu0 }
 0x2a6   : > { %v909_v30 = vadd.f32 %v1254_v29, %v1068_v16  ;;  %v903_v31 = vpop.f32.mrb[15].mxu0 }
 0x2a7   : > { %v904_v32 = vadd.f32 %v1068_v16, %v903_v31 }
 0x2a8   : > { %960 = vst.msk [vmem:[%s1523_s15 + $0x38] sm:$0xff] %vm952_vm2, %v909_v30 }
 0x2a9   : > { %959 = vst.msk [vmem:[%s1523_s15 + $0x30] sm:$0xff] %vm952_vm2, %v904_v32  ;;  %v1257_v33 = vpop.f32.mrb[16].mxu0 }
 0x2aa   : > { %v919_v34 = vadd.f32 %v1257_v33, %v1068_v16  ;;  %v913_v35 = vpop.f32.mrb[17].mxu0 }
 0x2ab   : > { %v914_v36 = vadd.f32 %v1068_v16, %v913_v35 }
 0x2ac   : > { %962 = vst.msk [vmem:[%s1523_s15 + $0x48] sm:$0xff] %vm952_vm2, %v919_v34 }
 0x2ad   : > { %961 = vst.msk [vmem:[%s1523_s15 + $0x40] sm:$0xff] %vm952_vm2, %v914_v36  ;;  %v1260_v37 = vpop.f32.mrb[18].mxu0 }
 0x2ae   : > { %v929_v38 = vadd.f32 %v1260_v37, %v1068_v16  ;;  %v923_v39 = vpop.f32.mrb[19].mxu0 }
 0x2af   : > { %v924_v40 = vadd.f32 %v1068_v16, %v923_v39 }
 0x2b0   : > { %964 = vst.msk [vmem:[%s1523_s15 + $0x58] sm:$0xff] %vm952_vm2, %v929_v38 }
 0x2b1   : > { %963 = vst.msk [vmem:[%s1523_s15 + $0x50] sm:$0xff] %vm952_vm2, %v924_v40  ;;  %v1263_v41 = vpop.f32.mrb[20].mxu0 }
 0x2b2   : > { %v939_v42 = vadd.f32 %v1263_v41, %v1068_v16  ;;  %v933_v43 = vpop.f32.mrb[21].mxu0 }
 0x2b3   : > { %v934_v44 = vadd.f32 %v1068_v16, %v933_v43 }
 0x2b4   : > { %966 = vst.msk [vmem:[%s1523_s15 + $0x68] sm:$0xff] %vm952_vm2, %v939_v42 }
 0x2b5   : > { %965 = vst.msk [vmem:[%s1523_s15 + $0x60] sm:$0xff] %vm952_vm2, %v934_v44  ;;  %v1266_v45 = vpop.f32.mrb[22].mxu0 }
 0x2b6   : > { %v949_v46 = vadd.f32 %v1266_v45, %v1068_v16  ;;  %v943_v47 = vpop.f32.mrb[23].mxu0 }
 0x2b7   : > { %v944_v48 = vadd.f32 %v1068_v16, %v943_v47 }
 0x2b8   : > { %968 = vst.msk [vmem:[%s1523_s15 + $0x78] sm:$0xff] %vm952_vm2, %v949_v46 }
 0x2b9   : > { %967 = vst.msk [vmem:[%s1523_s15 + $0x70] sm:$0xff] %vm952_vm2, %v944_v48 }
 0x2ba PF: > { %s17_s24 = sadd.s32 1, %s1325_s24  }
 0x2bb   : > { %p14_p4 = scmp.ge.s32.totalorder %s17_s24, 4  }
 0x2bd   :  { %16 = sbr.rel (!%p14_p4) target bundleno = 1 (0x1), region = 78 }

</bundles_post_ra>
